<compile_context>
chip_gen: v6e
topology: v6e:2x2x1
jax: 0.10.0
libtpu: 0.0.40
codegen_flags: <defaults>
</compile_context>

<pallas_src>
import math
import jax
import jax.numpy as jnp
from jax.experimental import pallas as pl
from jax.experimental.pallas import tpu as pltpu


def _add_pe_kernel(x_ref, pe_ref, o_ref):
    # Elementwise add on a lane-dense (1, tS, D) VMEM tile.  pe was pre-cast to
    # x.dtype, so this is a single-dtype VPU add; the astype is a no-op guard.
    o_ref[...] = (x_ref[...] + pe_ref[...]).astype(o_ref.dtype)


def make_positional_encoding(d_model: int, max_seq_length: int) -> jnp.ndarray:
    """Deterministic buffer init — mirrors PositionalEncoding.__init__ exactly."""
    position = jnp.arange(0, max_seq_length, dtype=jnp.float32)[:, None]       # (L, 1)
    div_term = jnp.exp(
        jnp.arange(0, d_model, 2, dtype=jnp.float32) * (-(math.log(10000.0) / d_model))
    )                                                                           # (D/2,)
    ang = position * div_term                                                   # (L, D/2)
    pe = jnp.zeros((max_seq_length, d_model), dtype=jnp.float32)
    pe = pe.at[:, 0::2].set(jnp.sin(ang))
    pe = pe.at[:, 1::2].set(jnp.cos(ang))
    return pe[None, :, :]                                                       # (1, L, D)


def _sublane_multiple(itemsize: int) -> int:
    # 8 sublanes of 32-bit; sub-32-bit dtypes pack along sublanes (bf16->16, int8->32).
    return max(8, 32 // itemsize)


def _x_tile_target_bytes() -> int:
    # v7x (3.2 TB/s HBM): ~4 MiB tiles keep the ~0.35us/step pipeline overhead
    # under ~8%.  v5e/v6e (0.8-1.4 TB/s): 2 MiB already sits near the roofline,
    # so don't spend the extra VMEM there.
    try:
        kind = jax.devices()[0].device_kind.lower()
    except Exception:  # pragma: no cover - defensive; default to the small tile
        kind = ""
    return 4 * 1024 * 1024 if "7" in kind else 2 * 1024 * 1024


def _pick_tile_rows(S: int, D: int, itemsize: int, B: int) -> int:
    """Rows per tile: sublane-aligned, VMEM-budgeted, divisor-of-S preferred."""
    sub = _sublane_multiple(itemsize)
    if S <= sub:
        return S  # full dim -> always layout-legal

    # x, pe and out all share x.dtype after the pre-cast, so the per-step VMEM
    # footprint is 3 streams * 2 buffers * tile_bytes; the x-tile target below
    # keeps that at <= 12 MiB (v5e/v6e) / <= 24 MiB (v7x).
    target_rows = _x_tile_target_bytes() // (D * itemsize)
    t = min(S, max(sub, (target_rows // sub) * sub))

    # Prefer a tile that divides S: no masked vst / wasted DMA on the last tile.
    cand = t
    while cand >= sub:
        if S % cand == 0:
            t = cand
            break
        cand -= sub

    # Megacore (v7x): with B == 1 the inner grid axis carries no parallelism,
    # so make sure the outer (row-tile) axis has at least 2 steps.
    if B == 1 and pl.cdiv(S, t) < 2:
        half = (((S + 1) // 2 + sub - 1) // sub) * sub
        t = min(t, max(sub, half))
    return t


def positional_encoding_forward(
    x: jnp.ndarray,
    pe: jnp.ndarray,
    *,
    min_kernel_bytes: int = 1 << 20,
    donate_x: bool = False,
) -> jnp.ndarray:
    """x: (B, S, D);  pe: (1, max_seq_length, D) float32.  Returns x + pe[:, :S]."""
    B, S, D = x.shape
    assert S <= pe.shape[1], "sequence length exceeds max_seq_length of the pe buffer"

    # Pre-cast pe ONCE to the activation dtype: for bf16 activations this cuts
    # pe read traffic in half and halves its VMEM double-buffer.
    pe_slice = pe[:, :S, :].astype(x.dtype)

    itemsize = jnp.dtype(x.dtype).itemsize
    total_bytes = B * S * D * itemsize

    # Fallbacks where a standalone pallas_call cannot win (mem-bound add):
    #  * D % 128 != 0: a flatten to a lane-dense minor dim generally lowers to
    #    an HBM relayout copy, and a masked-store kernel on the native shape is
    #    no better than the XLA-fused add.
    #  * tiny inputs: pallas_call fixed cost + pipeline warmup > memory time.
    if D % 128 != 0 or total_bytes < min_kernel_bytes:
        return x + pe_slice

    t_rows = _pick_tile_rows(S, D, itemsize, B)
    n_row_tiles = pl.cdiv(S, t_rows)

    return pl.pallas_call(
        _add_pe_kernel,
        out_shape=jax.ShapeDtypeStruct((B, S, D), x.dtype),
        grid_spec=pl.GridSpec(
            # Row-tile axis OUTER, batch INNER: the shared pe block index is
            # constant across consecutive (inner) batch steps, so the pipeline
            # skips re-DMAing pe B-1 times per row tile.
            grid=(n_row_tiles, B),
            in_specs=[
                pl.BlockSpec((1, t_rows, D), lambda r, b: (b, r, 0)),   # x tile
                pl.BlockSpec((1, t_rows, D), lambda r, b: (0, r, 0)),   # shared pe tile
            ],
            out_specs=pl.BlockSpec((1, t_rows, D), lambda r, b: (b, r, 0)),
        ),
        compiler_params=pltpu.CompilerParams(
            # Both axes are independent elementwise work -> shard across both
            # v7x TensorCores even when B == 1 (near-neutral on v5e/v6e).
            dimension_semantics=("parallel", "parallel"),
            # 3 streams x 2 buffers x (<= 4 MiB tile) <= 24 MiB; 32 MiB is safe
            # on every generation and avoids v5e's 16 MiB scoped-VMEM default.
            vmem_limit_bytes=32 * 1024 * 1024,
        ),
        cost_estimate=pl.CostEstimate(
            flops=int(B * S * D),
            transcendentals=0,
            bytes_accessed=int((2 * B + 1) * S * D * itemsize),
        ),
        # If the caller donates x, write the result in place over it.
        input_output_aliases={0: 0} if donate_x else {},
    )(x, pe_slice)


if __name__ == "__main__":
    key = jax.random.PRNGKey(0)
    k1, k2 = jax.random.split(key)

    # --- Kernel path: lane-dense d_model (multiple of 128), small shapes ----
    d_model, max_seq_length = 128, 64
    B, S = 2, 32
    x = jax.random.normal(k1, (B, S, d_model), dtype=jnp.float32)
    pe = make_positional_encoding(d_model, max_seq_length)
    out = positional_encoding_forward(x, pe, min_kernel_bytes=0)  # force kernel path
    out = jax.block_until_ready(out)
    ref = x + pe[:, :S]
    assert out.shape == (B, S, d_model)
    assert jnp.allclose(out, ref, atol=1e-6), "kernel path mismatch vs reference"

    # --- Fallback path: the original toy shape (d_model=32 -> XLA-fused add) --
    d_model2, max_len2 = 32, 16
    B2, S2 = 2, 8
    x2 = jax.random.normal(k2, (B2, S2, d_model2), dtype=jnp.float32)
    pe2 = make_positional_encoding(d_model2, max_len2)
    out2 = jax.block_until_ready(positional_encoding_forward(x2, pe2))
    assert out2.shape == (B2, S2, d_model2)
    assert jnp.allclose(out2, x2 + pe2[:, :S2], atol=1e-6), "fallback mismatch vs reference"

    print("KERNEL_OK")
</pallas_src>

<mosaic_0001>
module attributes {stable_mosaic.version = 11 : i64} {
  func.func @_add_pe_kernel(%arg0: i32, %arg1: i32, %arg2: memref<1x32x128xf32, #tpu.memory_space<vmem>>, %arg3: memref<1x32x128xf32, #tpu.memory_space<vmem>>, %arg4: memref<1x32x128xf32, #tpu.memory_space<vmem>>) attributes {dimension_semantics = [#tpu.dimension_semantics<parallel>, #tpu.dimension_semantics<parallel>], iteration_bounds = array<i64: 1, 2>, scalar_prefetch = 0 : i64, scratch_operands = 0 : i64, tpu.core_type = #tpu.core_type<tc>, window_params = [{transform_indices = @transform_0, window_bounds = array<i64: 1, 32, 128>}, {transform_indices = @transform_1, window_bounds = array<i64: 1, 32, 128>}, {transform_indices = @transform_2, window_bounds = array<i64: 1, 32, 128>}]} {
    %c0 = arith.constant 0 : index
    %c0_0 = arith.constant 0 : index
    %c0_1 = arith.constant 0 : index
    %0 = vector.load %arg2[%c0, %c0_0, %c0_1] : memref<1x32x128xf32, #tpu.memory_space<vmem>>, vector<1x32x128xf32>
    %c0_2 = arith.constant 0 : index
    %c0_3 = arith.constant 0 : index
    %c0_4 = arith.constant 0 : index
    %1 = vector.load %arg3[%c0_2, %c0_3, %c0_4] : memref<1x32x128xf32, #tpu.memory_space<vmem>>, vector<1x32x128xf32>
    %2 = arith.addf %0, %1 : vector<1x32x128xf32>
    %c0_5 = arith.constant 0 : index
    %c0_6 = arith.constant 0 : index
    %c0_7 = arith.constant 0 : index
    %3 = vector.load %arg4[%c0_5, %c0_6, %c0_7] : memref<1x32x128xf32, #tpu.memory_space<vmem>>, vector<1x32x128xf32>
    tpu.vector_store %arg4[%c0_5, %c0_6, %c0_7], %2 {strides = array<i32>} : memref<1x32x128xf32, #tpu.memory_space<vmem>>, vector<1x32x128xf32>,
    return
  }
  func.func @transform_0(%arg0: i32, %arg1: i32) -> (i32, i32, i32) {
    %c0_i32 = arith.constant 0 : i32
    %c0_i32_0 = arith.constant 0 : i32
    return %arg1, %arg0, %c0_i32 : i32, i32, i32
  }
  func.func @transform_1(%arg0: i32, %arg1: i32) -> (i32, i32, i32) {
    %c0_i32 = arith.constant 0 : i32
    %c0_i32_0 = arith.constant 0 : i32
    %c0_i32_1 = arith.constant 0 : i32
    return %c0_i32, %arg0, %c0_i32_0 : i32, i32, i32
  }
  func.func @transform_2(%arg0: i32, %arg1: i32) -> (i32, i32, i32) {
    %c0_i32 = arith.constant 0 : i32
    %c0_i32_0 = arith.constant 0 : i32
    return %arg1, %arg0, %c0_i32 : i32, i32, i32
  }
}

</mosaic_0001>

<bundles_post_ra>
// kernel: tpu_custom_call.1
= control target key start
LH: loop header
LB: loop body
LE: loop exit
PB: predicated region body
PF: predicated region fallthrough
CT: control target
= control target key end

     0   :  { %7 = vsyncpa [#allocation3], 0  ;;  %s782_s0 = inlined_call_operand.hbm [shape: f32[2,32,128], index: 0, kind: input, shape index: {}]   ;;  %s783_s1 = inlined_call_operand.hbm [shape: f32[1,32,128], index: 1, kind: input, shape index: {}]   ;;  %s784_s2 = inlined_call_operand.hbm [shape: f32[2,32,128], index: 2, kind: output, shape index: {}]  }
   0x1   :  { %9 = vsyncpa [#allocation3 + $0x1], 0 }
   0x2   :  { %10 = vsyncpa [#allocation6], 0 }
   0x3   :  { %11 = vsyncpa [#allocation4], 0 }
   0x4   :  { %13 = vsyncpa [#allocation4 + $0x1], 0  ;;  %s595_s9 = smov 0   ;;  %s597_s10 = smov 0  }
   0x5   :  { %s599_s11 = smov 0   ;;  %s601_s12 = smov 0  }
   0x6   :  { %s603_s13 = smov 0   ;;  %s605_s14 = smov 0  }
   0x7 LB: > { %s337_s15 = sadd.s32 4294967295, %s571_s14   ;;  %s338_s16 = sadd.s32 4294967294, %s571_s14   ;;  %s571_s14 = sphi %s605_s14, %s19_s14   ;;  %s567_s13 = sphi %s603_s13, %s804_s13   ;;  %s563_s12 = sphi %s601_s12, %s803_s12   ;;  %s559_s11 = sphi %s599_s11, %s802_s11   ;;  %s555_s10 = sphi %s597_s10, %s801_s10   ;;  %s551_s9 = sphi %s595_s9, %s800_s9  }
   0x8   : > { %p53_p0 = scmp.ne.s32.totalorder %s555_s10, %s551_s9  ;;  %p629_p1 = scmp.eq.s32.totalorder %s337_s15, 0 }
   0x9   : > { %p633_p2 = scmp.eq.s32.totalorder %s337_s15, 1  ;;  %p111_p3 = scmp.eq.s32.totalorder %s338_s16, 1 }
   0xa   : > { %p639_p4 = por %p629_p1, %p53_p0  ;;  %p339_p5 = scmp.ge.s32.totalorder %s571_s14, 1 }
   0xb   : > { %p644_p6 = por %p111_p3, %p53_p0  ;;  %p118_p7 = scmp.lt.s32.totalorder %s571_s14, 3 }
   0xc   : > { %s789_s19 = scalar_select %p639_p4, 1, 0 }
   0xd   : > { %s790_s20 = scalar_select %p644_p6, 1, 0 }
   0xe   : > { %p649_p8 = pnand %p339_p5, %p118_p7  ;;  %s573_s22 = smov [#allocation5]  }
   0xf   : > { %s133_s23 = sshll.u32 %s573_s22, 4  ;;  %s28_s25 = sadd.s32 1, %s567_s13  ;;  %s134_s23 = int_to_ptr.vmem [resolvable:$true] %s133_s23 }
  0x10   : > { %p364_p9 = pneg %p649_p8  ;;  %s444_s26 = scalar_lea.vmem %s134_s23, 512 }
  0x11   : > { %p445_p13 = scmp.ne.s32.totalorder %s134_s23, %s444_s26  ;;  %p452_p5 = scmp.lt.s32.totalorder %s134_s23, %s134_s23 }
  0x12   : > { %p658_p11 = pnand %p364_p9, %p629_p1  ;;  %p453_p7 = scmp.lt.s32.totalorder %s444_s26, %s444_s26 }
  0x14   : > { %p435_p12 = pneg %p658_p11  ;;  %p454_p6 = por %p453_p7, %p452_p5 }
  0x16   : > { %p447_p0 = pnand %p445_p13, %p435_p12 }
  0x18   : > { %p448_p3 = pneg %p447_p0 }
  0x1a   : > { %p455_p4 = pnand %p454_p6, %p448_p3 }
  0x1c   : > { %458 = shalt.err (!%p455_p4)
}
  0x1d   : > { %s786_s27 = smov 128   ;;  %s575_s28 = smov 8  }
  0x1e   : > { %367 = dma.hbm_to_vmem [thread:$0]  (!%p658_p11), %s783_s1, 512, %s134_s23, [#allocation6], %s786_s27, %s786_s27, %s575_s28  }
  0x1f   : > { %p29_p4 = scmp.ge.s32.totalorder %s28_s25, 2  ;;  %s40_s3 = sadd.s32 1, %s559_s11 }
  0x20   : > { %p47_p6 = scmp.ne.s32.totalorder %s559_s11, %s555_s10  ;;  %p48_p9 = scmp.eq.s32.totalorder %s571_s14, 0 }
  0x21   : > { %s806_s25 = smov (%p29_p4, %s28_s25), 0  ;;  %p377_p0 = scmp.lt.s32.totalorder %s571_s14, 2 }
  0x22   : > { %p679_p12 = por %p48_p9, %p47_p6  ;;  %p685_p13 = por %p633_p2, %p47_p6 }
  0x23   : > { %s35_s6 = ssub.s32 %s567_s13, %s806_s25  ;;  %s147_s7 = sand.u32 1, %s559_s11  }
  0x24   : > { %p38_p11 = scmp.eq.s32.totalorder %s35_s6, 0  ;;  %s342_s8 = sshll.u32 %s147_s7, 5 }
  0x25   : > { %s354_s16 = sshll.u32 %s567_s13, 9  ;;  %s151_s26 = scalar_lea.vmem [#allocation2], %s342_s8 }
  0x26   : > { %s694_s15 = scalar_select %p38_p11, %s559_s11, %s40_s3  }
  0x27   : > { %s159_s24 = scalar_lea.hbm %s782_s0, %s354_s16  ;;  %s160_s29 = sshll.u32 %s151_s26, 4  ;;  %s161_s29 = int_to_ptr.vmem [resolvable:$true] %s160_s29 }
  0x28   : > { %p702_p2 = pnand %p377_p0, %p679_p12  ;;  %s148_s30 = scalar_lea.sflag [#allocation3], %s147_s7 }
  0x29   : > { %s472_s6 = scalar_lea.vmem %s161_s29, 512  ;;  %s576_s3 = smov [#allocation2]  }
  0x2a   : > { %p461_p3 = pneg %p702_p2  ;;  %p473_p5 = scmp.ne.s32.totalorder %s161_s29, %s472_s6 }
  0x2b   : > { %s477_s27 = sshll.u32 %s576_s3, 4  ;;  %s478_s27 = int_to_ptr.vmem [resolvable:$false] %s477_s27 }
  0x2c   : > { %p475_p7 = pnand %p473_p5, %p461_p3  ;;  %s479_s16 = scalar_lea.vmem %s478_s27, 1024 }
  0x2d   : > { %p480_p6 = scmp.lt.s32.totalorder %s161_s29, %s478_s27  ;;  %p481_p9 = scmp.lt.s32.totalorder %s479_s16, %s472_s6 }
  0x2e   : > { %p476_p4 = pneg %p475_p7 }
  0x2f   : > { %p482_p11 = por %p481_p9, %p480_p6 }
  0x31   : > { %p483_p10 = pnand %p482_p11, %p476_p4 }
  0x33   : > { %486 = shalt.err (!%p483_p10)
}
  0x34   : > { %s796_s4 = smov 128   ;;  %172 = sbr.rel (%p649_p8) target bundleno = 85 (0x55), region = 28 }
  0x35   : > { %371 = dma.hbm_to_vmem [thread:$0]  (!%p702_p2), %s159_s24, 512, %s161_s29, %s148_s30, %s796_s4, %s796_s4, %s575_s28  }
  0x36   : > { %s716_s7 = sand.u32 (!%p649_p8), 1, %s555_s10   ;;  %p797_p12 = scmp.ne.s32.totalorder (!%p649_p8), %s789_s19, 0 }
  0x37   : > { %s346_s27 = sshll.u32 (!%p649_p8), %s716_s7, 5  ;;  %s175_s8 = scalar_lea.sflag (!%p649_p8), [#allocation3], %s716_s7 }
  0x38   : > { %s178_s22 = scalar_lea.vmem (!%p649_p8), [#allocation2], %s346_s27 }
  0x39   : > { %538 = dma.done.wait (%p797_p12), %s175_s8, 512  }
  0x3a   : > { %540 = vsyncadd (%p797_p12), %s175_s8, 4294966784 }
  0x3b   : > { %542 = dma.done.wait (%p629_p1), [#allocation6], 512  }
  0x3c   : > { %544 = vsyncadd (%p629_p1), [#allocation6], 4294966784  ;;  %s202_s21 = scalar_lea.vmem [#allocation7], %s346_s27  ;;  %s355_s23 = sshll.u32 %s563_s12, 9  ;;  %v206_v0 = vld [vmem:[%s178_s22] sm:$0xff]  ;;  %v207_v2 = vld [vmem:[%s178_s22 + $0x8] sm:$0xff] }
  0x3d   : > { %s238_s28 = sshll.u32 %s202_s21, 4  ;;  %v210_v1 = vld [vmem:[#allocation5] sm:$0xff]  ;;  %v211_v4 = vld [vmem:[#allocation5 + $0x8] sm:$0xff]  ;;  %v208_v5 = vld [vmem:[%s178_s22 + $0x10] sm:$0xff]  ;;  %s734_s12 = scalar_lea.hbm %s784_s2, %s355_s23  ;;  %s729_s28 = int_to_ptr.vmem [resolvable:$true] %s238_s28 }
  0x3e   : > { %v214_v3 = vadd.f32 %v210_v1, %v206_v0  ;;  %v212_v6 = vld [vmem:[#allocation5 + $0x10] sm:$0xff]  ;;  %v215_v7 = vadd.f32 %v211_v4, %v207_v2  ;;  %v209_v9 = vld [vmem:[%s178_s22 + $0x18] sm:$0xff]  ;;  %s223_s24 = scalar_lea.sflag [#allocation4], %s716_s7  ;;  %s487_s26 = scalar_lea.vmem %s729_s28, 512 }
  0x3f   : > { %v216_v8 = vadd.f32 %v212_v6, %v208_v5  ;;  %v213_v10 = vld [vmem:[#allocation5 + $0x18] sm:$0xff]  ;;  %p488_p1 = scmp.ne.s32.totalorder %s729_s28, %s487_s26  ;;  %s577_s29 = smov [#allocation7]  }
  0x40   : > { %218 = vst [vmem:[%s202_s21] sm:$0xff] %v214_v3  ;;  %v217_v11 = vadd.f32 %v213_v10, %v209_v9  ;;  %219 = vst [vmem:[%s202_s21 + $0x8] sm:$0xff] %v215_v7  ;;  %s491_s18 = sshll.u32 %s577_s29, 4  ;;  %s492_s18 = int_to_ptr.vmem [resolvable:$false] %s491_s18 }
  0x41   : > { %220 = vst [vmem:[%s202_s21 + $0x10] sm:$0xff] %v216_v8  ;;  %p489_p8 = pnand %p488_p1, %p685_p13  ;;  %s493_s30 = scalar_lea.vmem %s492_s18, 1024 }
  0x42   : > { %221 = vst [vmem:[%s202_s21 + $0x18] sm:$0xff] %v217_v11  ;;  %p494_p0 = scmp.lt.s32.totalorder %s729_s28, %s492_s18  ;;  %p495_p2 = scmp.lt.s32.totalorder %s493_s30, %s487_s26 }
  0x43   : > { %p490_p10 = pneg %p489_p8 }
  0x44   : > { %p496_p3 = por %p495_p2, %p494_p0 }
  0x46   : > { %p497_p5 = pnand %p496_p3, %p490_p10 }
  0x48   : > { %500 = shalt.err (!%p497_p5)
}
  0x49   : > { %s501_s6 = scalar_lea.hbm %s734_s12, 512  ;;  %s505_s4 = scalar_lea.hbm %s784_s2, 1024 }
  0x4a   : > { %p502_p7 = scmp.ne.s32.totalorder %s734_s12, %s501_s6  ;;  %p506_p9 = scmp.lt.s32.totalorder %s734_s12, %s784_s2 }
  0x4b   : > { %p507_p11 = scmp.lt.s32.totalorder %s505_s4, %s501_s6 }
  0x4c   : > { %p503_p4 = pnand %p502_p7, %p685_p13 }
  0x4d   : > { %p508_p12 = por %p507_p11, %p506_p9 }
  0x4e   : > { %p504_p6 = pneg %p503_p4 }
  0x50   : > { %p509_p1 = pnand %p508_p12, %p504_p6 }
  0x52   : > { %512 = shalt.err (!%p509_p1)
}
  0x53   : > { %s578_s22 = smov 128   ;;  %s579_s21 = smov 8  }
  0x54   : > { %362 = dma.vmem_to_hbm [thread:$0]  (%p685_p13), %s729_s28, 512, %s734_s12, %s223_s24, %s578_s22, %s578_s22, %s579_s21  }
  0x55 PF: > { %s253_s23 = sand.u32 1, %s551_s9   ;;  %p798_p8 = scmp.ne.s32.totalorder %s790_s20, 0 }
  0x56   : > { %p799_p10 = scmp.ge.s32.totalorder %s571_s14, 2  ;;  %s254_s17 = scalar_lea.sflag [#allocation4], %s253_s23 }
  0x58   : > { %p373_p0 = pnand %p799_p10, %p798_p8 }
  0x5a   : > { %p374_p2 = pneg %p373_p0 }
  0x5c   : > { %546 = dma.done.wait (%p374_p2), %s254_s17, 512  }
  0x5d   : > { %548 = vsyncadd (%p374_p2), %s254_s17, 4294966784  ;;  %s19_s14 = sadd.s32 1, %s571_s14   ;;  %s800_s9 = smov %s555_s10 }
  0x5e   : > { %p16_p3 = scmp.ge.s32.totalorder %s19_s14, 4   ;;  %s801_s10 = smov %s559_s11 }
  0x5f   : > { %s802_s11 = smov %s694_s15  ;;  %s803_s12 = smov %s567_s13 }
  0x60   : > { %s804_s13 = smov %s806_s25  ;;  %18 = sbr.rel (!%p16_p3) target bundleno = 7 (0x7), region = 78 }
  0x65   :  { %259 = vsyncpa [#allocation3], 1 }
  0x66   :  { %261 = vsyncpa [#allocation3 + $0x1], 1 }
  0x67   :  { %262 = vsyncpa [#allocation6], 1 }
  0x68   :  { %263 = vsyncpa [#allocation4], 1 }
  0x69   :  { %265 = vsyncpa [#allocation4 + $0x1], 1 }

</bundles_post_ra>
